<compile_context>
chip_gen: v7x
topology: tpu7x:2x2x1
jax: 0.10.0
libtpu: 0.0.40
codegen_flags: <defaults>
</compile_context>

<pallas_src>
import functools

import jax
import jax.numpy as jnp
from jax.experimental import pallas as pl
from jax.experimental.pallas import tpu as pltpu

cfg = {'VGG19': [64, 64, 'M', 128, 128, 'M', 256, 256, 256, 256, 'M',
                 512, 512, 512, 512, 'M', 512, 512, 512, 512, 'M']}

BN_EPS = 1e-5
_VMEM_LIMIT = 32 * 1024 * 1024      # safe on v5e/v6e/v7x; peak use ~10 MiB/call


def _cparams(sem=None):
    if sem is None:
        return pltpu.CompilerParams(vmem_limit_bytes=_VMEM_LIMIT)
    return pltpu.CompilerParams(dimension_semantics=sem,
                                vmem_limit_bytes=_VMEM_LIMIT)


# ----------------------------------------------------------------------------
# Kernel A: one Conv(3x3, pad=1) + folded BN(+bias) + ReLU layer, multi-row M
# tile, with the following MaxPool2d(2,2) optionally fused into the epilogue.
# Grid = (batch, row_block).  Nine (rows*W, Cin) x (Cin, Cout) MXU matmuls
# accumulated in f32.  Only unit-stride ref slices are used.
# ----------------------------------------------------------------------------
def _conv_bn_relu_kernel(x_ref, w_ref, scale_ref, shift_ref, o_ref, *, pool):
    # x_ref:     (1, H+2, W+2, Cin)  zero-padded bf16 slab, one image
    # w_ref:     (3, 3, Cin, Cout)   bf16 HWIO weights
    # scale_ref: (1, Cout) f32       gamma / sqrt(var + eps)
    # shift_ref: (1, Cout) f32       (conv_bias - mean) * scale + beta
    # o_ref:     (1, 1, Mo, Cout)    bf16; Mo = rows*W (no pool) or rows*W/4
    Cin = w_ref.shape[2]
    Cout = w_ref.shape[3]
    W = x_ref.shape[2] - 2
    Mo = o_ref.shape[2]
    M = Mo * 4 if pool else Mo
    rows = M // W
    row0 = pl.program_id(1) * rows
    acc = jnp.zeros((M, Cout), jnp.float32)
    for ky in range(3):
        for kx in range(3):
            patch = x_ref[0, pl.ds(row0 + ky, rows), pl.ds(kx, W), :]
            acc = acc + jnp.dot(patch.reshape(M, Cin), w_ref[ky, kx],
                                preferred_element_type=jnp.float32)
    y = jnp.maximum(acc * scale_ref[0, :] + shift_ref[0, :], 0.0)
    if pool:
        # Fused 2x2 max-pool on the (rows, W) block: reshape + static indexing
        # only (no strided slicing of refs or values along memory dims).
        y = y.reshape(rows // 2, 2, W, Cout)
        y = jnp.maximum(y[:, 0], y[:, 1])          # (rows//2, W, Cout)
        y = y.reshape(Mo, 2, Cout)                 # pair adjacent columns
        y = jnp.maximum(y[:, 0], y[:, 1])          # (Mo, Cout)
    o_ref[0, 0] = y.astype(o_ref.dtype)


def conv_bn_relu(x, w, scale, shift, *, pool=False):
    # x: (N, H, W, Cin); w: (3, 3, Cin, Cout); scale/shift: (Cout,)
    N, H, W, Cin = x.shape
    Cout = w.shape[-1]
    rows = min(H, max(1, 256 // W))                # M = rows*W -> up to 256
    while rows > 1 and (H % rows != 0 or (pool and rows % 2 != 0)):
        rows -= 1
    assert H % rows == 0 and (not pool or (rows % 2 == 0 and W % 2 == 0))
    M = rows * W
    Mo = M // 4 if pool else M
    n_r = H // rows
    xp = jnp.pad(x, ((0, 0), (1, 1), (1, 1), (0, 0))).astype(jnp.bfloat16)
    out = pl.pallas_call(
        functools.partial(_conv_bn_relu_kernel, pool=pool),
        out_shape=jax.ShapeDtypeStruct((N, n_r, Mo, Cout), jnp.bfloat16),
        grid=(N, n_r),
        in_specs=[
            pl.BlockSpec((1, H + 2, W + 2, Cin), lambda n, r: (n, 0, 0, 0)),
            pl.BlockSpec((3, 3, Cin, Cout), lambda n, r: (0, 0, 0, 0)),
            pl.BlockSpec((1, Cout), lambda n, r: (0, 0)),
            pl.BlockSpec((1, Cout), lambda n, r: (0, 0)),
        ],
        out_specs=pl.BlockSpec((1, 1, Mo, Cout), lambda n, r: (n, r, 0, 0)),
        compiler_params=_cparams(("parallel", "parallel")),
    )(xp, w.astype(jnp.bfloat16),
      scale.reshape(1, Cout).astype(jnp.float32),
      shift.reshape(1, Cout).astype(jnp.float32))
    Ho, Wo = (H // 2, W // 2) if pool else (H, W)
    return out.reshape(N, Ho, Wo, Cout)            # metadata-only reshape


# ----------------------------------------------------------------------------
# Kernel B: im2col GEMM for the Cin=3 first layer (K = 27 kept MXU-dense).
# ----------------------------------------------------------------------------
def _gemm_bn_relu_kernel(x_ref, w_ref, scale_ref, shift_ref, o_ref):
    # x_ref: (1, TM, K) bf16 patches; w_ref: (K, Cout) bf16
    acc = jnp.dot(x_ref[0], w_ref[...], preferred_element_type=jnp.float32)
    y = acc * scale_ref[0, :] + shift_ref[0, :]
    o_ref[0] = jnp.maximum(y, 0.0).astype(o_ref.dtype)


def _im2col_3x3(x):
    # (N, H, W, C) -> (N, H*W, 9*C); tap order (ky, kx, c) matches
    # w.reshape(9*C, Cout).
    N, H, W, C = x.shape
    xp = jnp.pad(x, ((0, 0), (1, 1), (1, 1), (0, 0)))
    taps = [xp[:, ky:ky + H, kx:kx + W, :]
            for ky in range(3) for kx in range(3)]
    return jnp.concatenate(taps, axis=-1).reshape(N, H * W, 9 * C)


def conv_bn_relu_im2col(x, w, scale, shift):
    N, H, W, Cin = x.shape
    Cout = w.shape[-1]
    K = 9 * Cin
    HW = H * W
    TM = min(HW, 256)
    while HW % TM:
        TM -= 1
    xi = _im2col_3x3(x).astype(jnp.bfloat16)
    wf = w.reshape(K, Cout).astype(jnp.bfloat16)
    out = pl.pallas_call(
        _gemm_bn_relu_kernel,
        out_shape=jax.ShapeDtypeStruct((N, HW, Cout), jnp.bfloat16),
        grid=(N, HW // TM),
        in_specs=[
            pl.BlockSpec((1, TM, K), lambda n, m: (n, m, 0)),
            pl.BlockSpec((K, Cout), lambda n, m: (0, 0)),
            pl.BlockSpec((1, Cout), lambda n, m: (0, 0)),
            pl.BlockSpec((1, Cout), lambda n, m: (0, 0)),
        ],
        out_specs=pl.BlockSpec((1, TM, Cout), lambda n, m: (n, m, 0)),
        compiler_params=_cparams(("parallel", "parallel")),
    )(xi, wf, scale.reshape(1, Cout).astype(jnp.float32),
      shift.reshape(1, Cout).astype(jnp.float32))
    return out.reshape(N, H, W, Cout)


# ----------------------------------------------------------------------------
# Kernel C: a run of L same-shape Conv(C->C) + BN + ReLU layers, ending with a
# fused MaxPool2d(2,2), in ONE pallas_call.  Grid = (batch, layer) with the
# layer axis "arbitrary": the running activation lives in a zero-bordered VMEM
# scratch, the layer-l weight block streams from HBM (double-buffered by the
# BlockSpec pipeline) while layer l-1's matmuls run, and the pooled output is
# written only at the last layer.
# ----------------------------------------------------------------------------
def _conv_stack_kernel(x_ref, w_ref, scale_ref, shift_ref, o_ref, act_ref):
    # x_ref:     (1, H, W, C)      bf16 input of the first stacked layer
    # w_ref:     (1, 3, 3, C, C)   bf16 weights of layer l
    # scale_ref: (1, C) f32; shift_ref: (1, C) f32   folded BN of layer l
    # o_ref:     (1, H//2, W//2, C) bf16 pooled output (written at l == L-1)
    # act_ref:   (H+2, W+2, C)     bf16 zero-bordered running activation
    l = pl.program_id(1)
    L = pl.num_programs(1)
    H, W = x_ref.shape[1], x_ref.shape[2]
    C = w_ref.shape[4]

    @pl.when(l == 0)
    def _():
        act_ref[...] = jnp.zeros(act_ref.shape, act_ref.dtype)
        act_ref[pl.ds(1, H), pl.ds(1, W), :] = x_ref[0]

    acc = jnp.zeros((H * W, C), jnp.float32)
    for ky in range(3):
        for kx in range(3):
            patch = act_ref[pl.ds(ky, H), pl.ds(kx, W), :]
            acc = acc + jnp.dot(patch.reshape(H * W, C), w_ref[0, ky, kx],
                                preferred_element_type=jnp.float32)
    y = jnp.maximum(acc * scale_ref[0, :] + shift_ref[0, :], 0.0)

    @pl.when(l < L - 1)
    def _():
        act_ref[pl.ds(1, H), pl.ds(1, W), :] = \
            y.reshape(H, W, C).astype(act_ref.dtype)

    @pl.when(l == L - 1)
    def _():
        p = y.reshape(H // 2, 2, W, C)
        p = jnp.maximum(p[:, 0], p[:, 1])           # (H//2, W, C)
        p = p.reshape(H // 2, W // 2, 2, C)
        p = jnp.maximum(p[:, :, 0], p[:, :, 1])     # (H//2, W//2, C)
        o_ref[0] = p.astype(o_ref.dtype)


def conv_stack_bn_relu_pool(x, w_stack, scale_stack, shift_stack):
    # x: (N, H, W, C); w_stack: (L, 3, 3, C, C); scale/shift_stack: (L, C)
    N, H, W, C = x.shape
    L = w_stack.shape[0]
    assert H % 2 == 0 and W % 2 == 0
    return pl.pallas_call(
        _conv_stack_kernel,
        out_shape=jax.ShapeDtypeStruct((N, H // 2, W // 2, C), jnp.bfloat16),
        grid=(N, L),
        in_specs=[
            pl.BlockSpec((1, H, W, C), lambda n, l: (n, 0, 0, 0)),
            pl.BlockSpec((1, 3, 3, C, C), lambda n, l: (l, 0, 0, 0, 0)),
            pl.BlockSpec((1, C), lambda n, l: (l, 0)),
            pl.BlockSpec((1, C), lambda n, l: (l, 0)),
        ],
        out_specs=pl.BlockSpec((1, H // 2, W // 2, C),
                               lambda n, l: (n, 0, 0, 0)),
        scratch_shapes=[pltpu.VMEM((H + 2, W + 2, C), jnp.bfloat16)],
        compiler_params=_cparams(("parallel", "arbitrary")),
    )(x.astype(jnp.bfloat16), w_stack.astype(jnp.bfloat16),
      scale_stack.astype(jnp.float32), shift_stack.astype(jnp.float32))


# ----------------------------------------------------------------------------
# Classifier: Linear(512, 7) with bias (bf16 operands, f32 accumulation).
# ----------------------------------------------------------------------------
def _linear_kernel(x_ref, w_ref, b_ref, o_ref):
    o_ref[...] = (jnp.dot(x_ref[...], w_ref[...],
                          preferred_element_type=jnp.float32)
                  + b_ref[...]).astype(o_ref.dtype)


def linear(x, w, b):
    N, K = x.shape
    M = w.shape[1]
    return pl.pallas_call(
        _linear_kernel,
        out_shape=jax.ShapeDtypeStruct((N, M), jnp.float32),
        in_specs=[pl.BlockSpec((N, K), lambda: (0, 0)),
                  pl.BlockSpec((K, M), lambda: (0, 0)),
                  pl.BlockSpec((1, M), lambda: (0, 0))],
        out_specs=pl.BlockSpec((N, M), lambda: (0, 0)),
        compiler_params=_cparams(),
    )(x.astype(jnp.bfloat16), w.astype(jnp.bfloat16),
      b.reshape(1, M).astype(jnp.float32))


# ----------------------------------------------------------------------------
# Deterministic parameter init (synthetic; mirrors the shapes of __init__).
# ----------------------------------------------------------------------------
def init_params(key):
    layers = []
    in_c = 3
    for v in cfg['VGG19']:
        if v == 'M':
            layers.append(('M', None))
            continue
        key, kw, kb = jax.random.split(key, 3)
        fan_in = in_c * 9
        w = (jax.random.normal(kw, (3, 3, in_c, v), jnp.float32)
             * jnp.sqrt(2.0 / fan_in)).astype(jnp.bfloat16)
        conv_b = jax.random.normal(kb, (v,), jnp.float32) * 0.01
        # BatchNorm2d defaults: gamma=1, beta=0, running_mean=0, running_var=1
        gamma = jnp.ones((v,), jnp.float32)
        beta = jnp.zeros((v,), jnp.float32)
        mean = jnp.zeros((v,), jnp.float32)
        var = jnp.ones((v,), jnp.float32)
        scale = gamma / jnp.sqrt(var + BN_EPS)
        shift = (conv_b - mean) * scale + beta       # conv bias folded into BN
        layers.append(('C', (w, scale, shift)))
        in_c = v
    key, kw, kb = jax.random.split(key, 3)
    wl = (jax.random.normal(kw, (512, 7), jnp.float32)
          * jnp.sqrt(1.0 / 512.0)).astype(jnp.bfloat16)
    bl = jax.random.normal(kb, (7,), jnp.float32) * 0.01
    return layers, (wl, bl)


def build_plan(layers):
    """Group per-layer params into fused ops:
       'first'  -> im2col GEMM conv (Cin=3, no pool)
       'conv'   -> single conv, optional fused pool
       'stack'  -> run of same-shape convs + fused pool (stacked weights)."""
    blocks, cur = [], []
    for kind, p in layers:
        if kind == 'M':
            blocks.append(cur)
            cur = []
        else:
            cur.append(p)
    assert not cur, "cfg must end every conv block with 'M'"
    plan = []
    for blk in blocks:
        ch = blk[-1][0].shape[-1]
        run_start = len(blk)
        while (run_start > 0
               and blk[run_start - 1][0].shape[2] == ch
               and blk[run_start - 1][0].shape[3] == ch):
            run_start -= 1
        run_len = len(blk) - run_start
        for w, s, b in blk[:run_start]:
            if w.shape[2] == 3:
                plan.append(('first', (w, s, b)))
            else:
                plan.append(('conv', (w, s, b), False))
        if run_len >= 2:
            ws = jnp.stack([w for (w, _, _) in blk[run_start:]])
            ss = jnp.stack([s for (_, s, _) in blk[run_start:]])
            bs = jnp.stack([b for (_, _, b) in blk[run_start:]])
            plan.append(('stack', (ws, ss, bs)))
        else:                                   # single trailing conv + pool
            w, s, b = blk[run_start]
            plan.append(('conv', (w, s, b), True))
    return plan


# ----------------------------------------------------------------------------
# Full forward pass.
# ----------------------------------------------------------------------------
def vgg_forward(x_nchw, plan, classifier):
    x = jnp.transpose(x_nchw, (0, 2, 3, 1)).astype(jnp.bfloat16)  # NCHW->NHWC
    for op in plan:
        if op[0] == 'first':
            w, s, b = op[1]
            x = conv_bn_relu_im2col(x, w, s, b)
        elif op[0] == 'conv':
            w, s, b = op[1]
            x = conv_bn_relu(x, w, s, b, pool=op[2])
        else:  # 'stack'
            ws, ss, bs = op[1]
            x = conv_stack_bn_relu_pool(x, ws, ss, bs)
    # AvgPool2d(kernel_size=1, stride=1) is the identity -> skipped.
    N = x.shape[0]
    x = x.reshape(N, -1)                 # (N, 512); H=W=1 so flatten orders agree
    # TODO(synk): F.dropout is the identity in eval mode; training-mode dropout omitted.
    wl, bl = classifier
    return linear(x, wl, bl)


if __name__ == "__main__":
    key = jax.random.PRNGKey(0)
    key, kx = jax.random.split(key)
    # Classifier Linear(512, 7) implies 1x1x512 features => 3x32x32 input (5 maxpools).
    x = jax.random.normal(kx, (2, 3, 32, 32), jnp.float32)   # NCHW like PyTorch
    layers, classifier = init_params(key)
    plan = build_plan(layers)
    out = vgg_forward(x, plan, classifier)
    out = jax.block_until_ready(out)
    assert out.shape == (2, 7) and out.dtype == jnp.float32
    print("KERNEL_OK")
</pallas_src>

<mosaic_0001>
module attributes {stable_mosaic.version = 11 : i64} {
  func.func @_gemm_bn_relu_kernel(%arg0: i32, %arg1: i32, %arg2: memref<1x256x27xbf16, #tpu.memory_space<vmem>>, %arg3: memref<27x64xbf16, #tpu.memory_space<vmem>>, %arg4: memref<1x64xf32, #tpu.memory_space<vmem>>, %arg5: memref<1x64xf32, #tpu.memory_space<vmem>>, %arg6: memref<1x256x64xbf16, #tpu.memory_space<vmem>>) attributes {dimension_semantics = [#tpu.dimension_semantics<parallel>, #tpu.dimension_semantics<parallel>], iteration_bounds = array<i64: 2, 4>, scalar_prefetch = 0 : i64, scratch_operands = 0 : i64, tpu.core_type = #tpu.core_type<tc>, window_params = [{transform_indices = @transform_0, window_bounds = array<i64: 1, 256, 27>}, {pipeline_mode = #tpu.pipeline_mode<synchronous>, transform_indices = @transform_1, window_bounds = array<i64: 27, 64>}, {pipeline_mode = #tpu.pipeline_mode<synchronous>, transform_indices = @transform_2, window_bounds = array<i64: 1, 64>}, {pipeline_mode = #tpu.pipeline_mode<synchronous>, transform_indices = @transform_3, window_bounds = array<i64: 1, 64>}, {transform_indices = @transform_4, window_bounds = array<i64: 1, 256, 64>}]} {
    %c0 = arith.constant 0 : index
    %c0_0 = arith.constant 0 : index
    %c0_1 = arith.constant 0 : index
    %0 = vector.load %arg2[%c0, %c0_0, %c0_1] : memref<1x256x27xbf16, #tpu.memory_space<vmem>>, vector<1x256x27xbf16>
    %1 = vector.shape_cast %0 : vector<1x256x27xbf16> to vector<256x27xbf16>
    %c0_2 = arith.constant 0 : index
    %c0_3 = arith.constant 0 : index
    %2 = vector.load %arg3[%c0_2, %c0_3] : memref<27x64xbf16, #tpu.memory_space<vmem>>, vector<27x64xbf16>
    %cst = arith.constant dense<0.000000e+00> : vector<256x64xf32>
    %3 = tpu.matmul %1, %2, %cst {dimension_numbers = #tpu.dot_dimension_numbers<[1], [0], [0], [1], [0, 0, 1, 1], [], []>} : vector<256x27xbf16>, vector<27x64xbf16>, vector<256x64xf32> -> vector<256x64xf32>
    %c0_4 = arith.constant 0 : index
    %c0_5 = arith.constant 0 : index
    %4 = vector.load %arg4[%c0_4, %c0_5] : memref<1x64xf32, #tpu.memory_space<vmem>>, vector<1x64xf32>
    %5 = vector.shape_cast %4 : vector<1x64xf32> to vector<64xf32>
    %6 = vector.shape_cast %5 : vector<64xf32> to vector<1x64xf32>
    %7 = vector.broadcast %6 : vector<1x64xf32> to vector<256x64xf32>
    %8 = arith.mulf %3, %7 : vector<256x64xf32>
    %c0_6 = arith.constant 0 : index
    %c0_7 = arith.constant 0 : index
    %9 = vector.load %arg5[%c0_6, %c0_7] : memref<1x64xf32, #tpu.memory_space<vmem>>, vector<1x64xf32>
    %10 = vector.shape_cast %9 : vector<1x64xf32> to vector<64xf32>
    %11 = vector.shape_cast %10 : vector<64xf32> to vector<1x64xf32>
    %12 = vector.broadcast %11 : vector<1x64xf32> to vector<256x64xf32>
    %13 = arith.addf %8, %12 : vector<256x64xf32>
    %cst_8 = arith.constant 0.000000e+00 : f32
    %14 = vector.broadcast %cst_8 : f32 to vector<256x64xf32>
    %15 = arith.maximumf %13, %14 : vector<256x64xf32>
    %16 = arith.truncf %15 : vector<256x64xf32> to vector<256x64xbf16>
    %c0_9 = arith.constant 0 : index
    %c0_10 = arith.constant 0 : index
    %c0_11 = arith.constant 0 : index
    %17 = vector.load %arg6[%c0_9, %c0_10, %c0_11] : memref<1x256x64xbf16, #tpu.memory_space<vmem>>, vector<1x256x64xbf16>
    %18 = vector.shape_cast %17 : vector<1x256x64xbf16> to vector<256x64xbf16>
    %19 = vector.shape_cast %16 : vector<256x64xbf16> to vector<1x256x64xbf16>
    tpu.vector_store %arg6[%c0_9, %c0_10, %c0_11], %19 {strides = array<i32>} : memref<1x256x64xbf16, #tpu.memory_space<vmem>>, vector<1x256x64xbf16>,
    return
  }
  func.func @transform_0(%arg0: i32, %arg1: i32) -> (i32, i32, i32) {
    %c0_i32 = arith.constant 0 : i32
    %c0_i32_0 = arith.constant 0 : i32
    return %arg0, %arg1, %c0_i32 : i32, i32, i32
  }
  func.func @transform_1(%arg0: i32, %arg1: i32) -> (i32, i32) {
    %c0_i32 = arith.constant 0 : i32
    %c0_i32_0 = arith.constant 0 : i32
    %c0_i32_1 = arith.constant 0 : i32
    return %c0_i32, %c0_i32_0 : i32, i32
  }
  func.func @transform_2(%arg0: i32, %arg1: i32) -> (i32, i32) {
    %c0_i32 = arith.constant 0 : i32
    %c0_i32_0 = arith.constant 0 : i32
    %c0_i32_1 = arith.constant 0 : i32
    return %c0_i32, %c0_i32_0 : i32, i32
  }
  func.func @transform_3(%arg0: i32, %arg1: i32) -> (i32, i32) {
    %c0_i32 = arith.constant 0 : i32
    %c0_i32_0 = arith.constant 0 : i32
    %c0_i32_1 = arith.constant 0 : i32
    return %c0_i32, %c0_i32_0 : i32, i32
  }
  func.func @transform_4(%arg0: i32, %arg1: i32) -> (i32, i32, i32) {
    %c0_i32 = arith.constant 0 : i32
    %c0_i32_0 = arith.constant 0 : i32
    return %arg0, %arg1, %c0_i32 : i32, i32, i32
  }
}

</mosaic_0001>

<bundles_post_ra>
// kernel: tpu_custom_call.1
= control target key start
LH: loop header
LB: loop body
LE: loop exit
PB: predicated region body
PF: predicated region fallthrough
CT: control target
= control target key end

     0   :  { %s1239_s15 = smov 0   ;;  %s1241_s16 = smov 0   ;;  %s1480_s0 = inlined_call_operand.vmem [shape: bf16[2,1024,27], index: 0, kind: input, shape index: {}]   ;;  %s1481_s1 = inlined_call_operand.vmem [shape: bf16[27,64], index: 1, kind: input, shape index: {}]   ;;  %s1482_s2 = inlined_call_operand.vmem [shape: f32[1,64], index: 2, kind: input, shape index: {}]   ;;  %s1483_s3 = inlined_call_operand.vmem [shape: f32[1,64], index: 3, kind: input, shape index: {}]   ;;  %s1484_s4 = inlined_call_operand.vmem [shape: bf16[2,1024,64], index: 4, kind: output, shape index: {}]  }
   0x1   :  { %s1243_s17 = smov 0   ;;  %s1245_s18 = smov 0  }
   0x2   :  { %s1247_s19 = smov 0  }
   0x3 LB: > { %s23_s20 = sadd.s32 1, %s1203_s17  ;;  %s26_s21 = sadd.s32 1, %s1207_s18  ;;  %s1211_s19 = sphi %s1247_s19, %s14_s19   ;;  %s1207_s18 = sphi %s1245_s18, %s1488_s18   ;;  %s1203_s17 = sphi %s1243_s17, %s1487_s17   ;;  %s1199_s16 = sphi %s1241_s16, %s1486_s16   ;;  %s1195_s15 = sphi %s1239_s15, %s1485_s15  }
   0x4   : > { %p24_p0 = scmp.ge.s32.totalorder %s23_s20, 4  ;;  %p947_p1 = scmp.ge.s32.totalorder %s1211_s19, 1 }
   0x5   : > { %p183_p2 = scmp.lt.s32.totalorder %s1211_s19, 9 }
   0x6   : > { %s1490_s20 = smov (%p24_p0, %s23_s20), 0  ;;  %s1492_s21 = smov (!%p24_p0, %s26_s21), %s1207_s18 }
   0x7   : > { %p184_p3 = pnand %p947_p1, %p183_p2  ;;  %p28_p4 = scmp.ge.s32.totalorder %s1492_s21, 2 }
   0x8   : > { %v1155_v0 = vld [vmem:[%s1481_s1] sm:$0xff] (!%p184_p3)   ;;  %vm414_vm0 = vcmask (!%p184_p3), 1044480   ;;  %v1156_v1 = vld [vmem:[%s1481_s1 + $0x8] sm:$0x3f] (!%p184_p3)   ;;  %vm415_vm1 = vcmask (!%p184_p3), 1045504   ;;  %s948_s26 = sshll.u32 (!%p184_p3), %s1195_s15, 5 }
   0x9   : > { %s1494_s21 = smov (%p28_p4, %s1492_s21), 0  ;;  %187 = sbr.rel (%p184_p3) target bundleno = 274 (0x112), region = 36 }
   0xa   : > { %1074 = vmatprep.subr.bf16.mxu0 (!%p184_p3), %v1155_v0  ;;  %1110 = vmatprep.subr.bf16.mxu1 (!%p184_p3), %v1155_v0  ;;  %p218_p5 = scmp.lt.s32.totalorder (!%p184_p3), %s1199_s16, 1  ;;  %v1213_v2 = vmov (!%p184_p3), 65535   ;;  %p220_p6 = scmp.lt.s32.totalorder (!%p184_p3), %s948_s26, 127  ;;  %vm365_vm2 = vcmask (!%p184_p3), 220160   ;;  %v1323_v22 = vld [vmem:[%s1482_s2] ss:$0 sm:$0xff] (!%p184_p3) }
   0xb   : > { %1075 = vmatpush3.bf16.msra.mxu0 (!%p184_p3), %v1155_v0  ;;  %1112 = vmatpush3.bf16.msra.mxu1 (!%p184_p3), %v1155_v0  ;;  %v416_v3 = vsel (!%p184_p3), %vm414_vm0, 4294967295, %v1213_v2  ;;  %v1328_v24 = vld [vmem:[%s1483_s3] ss:$0 sm:$0xff] (!%p184_p3)  ;;  %vm820_vm3 = vcmask (!%p184_p3), 519168  }
   0xc   : > { %v417_v4 = vsel (!%p184_p3), %vm415_vm1, %v416_v3, 0 }
   0xd   : > { %v419_v5 = vand.u32 (!%p184_p3), %v1156_v1, %v417_v4 }
   0xf   : > { %1076 = vmatprep.subr.bf16.mxu0 (!%p184_p3), %v419_v5  ;;  %1111 = vmatprep.subr.bf16.mxu1 (!%p184_p3), %v419_v5 }
  0x10   : > { %s1496_s16 = smov (!%p218_p5, %s1199_s16), 1  ;;  %s1498_s26 = smov (!%p220_p6, %s948_s26), 127  ;;  %1077 = vmatpush3.bf16.msra.mxu0 %v419_v5  ;;  %1113 = vmatpush3.bf16.msra.mxu1 %v419_v5 }
  0x11   : > { %s949_s27 = sshll.u32 %s1496_s16, 7 }
  0x12   : > { %s1278_s28 = sadd.s32 %s949_s27, %s1498_s26 }
  0x13   : > { %s950_s29 = sshll.u32 %s1278_s28, 2 }
  0x14   : > { %s1286_s6 = scalar_lea.vmem %s1480_s0, %s950_s29  ;;  %s1348_s13 = scalar_lea.vmem %s1484_s4, %s950_s29 }
  0x15   : > { %v1157_v6 = vld [vmem:[%s1286_s6] sm:$0xff]   ;;  %v1159_v8 = vld [vmem:[%s1286_s6 + $0x8] sm:$0xff]   ;;  %v1161_v10 = vld [vmem:[%s1286_s6 + $0x10] sm:$0xff]  }
  0x16   : > { %v1158_v7 = vld [vmem:[%s1286_s6 + $0x40] sm:$0xff]   ;;  %1078 = vmatprep.mubr.msk.bf16.mxu0 %vm365_vm2, %v1157_v6  ;;  %v1160_v9 = vld [vmem:[%s1286_s6 + $0x48] sm:$0xff]   ;;  %v1162_v11 = vld [vmem:[%s1286_s6 + $0x50] sm:$0xff]  }
  0x17   : > { %1094 = vmatprep.mubr.msk.bf16.mxu1 %vm365_vm2, %v1158_v7  ;;  %1079 = vmatmul.mubr.msk.bf16.vlgmr.msra.gmra.mrb[0].mxu0 %vm365_vm2, %v1159_v8  ;;  %v1163_v12 = vld [vmem:[%s1286_s6 + $0x18] sm:$0xff]   ;;  %v1165_v14 = vld [vmem:[%s1286_s6 + $0x20] sm:$0xff]   ;;  %v1167_v16 = vld [vmem:[%s1286_s6 + $0x28] sm:$0xff]  }
  0x18   : > { %1095 = vmatmul.mubr.msk.bf16.vlgmr.msra.gmra.mrb[0].mxu1 %vm365_vm2, %v1160_v9  ;;  %1082 = vmatprep.mubr.msk.bf16.mxu0 %vm365_vm2, %v1161_v10  ;;  %v1164_v13 = vld [vmem:[%s1286_s6 + $0x58] sm:$0xff]   ;;  %v1166_v15 = vld [vmem:[%s1286_s6 + $0x60] sm:$0xff]   ;;  %v1168_v17 = vld [vmem:[%s1286_s6 + $0x68] sm:$0xff]  }
  0x19   : > { %1098 = vmatprep.mubr.msk.bf16.mxu1 %vm365_vm2, %v1162_v11  ;;  %v1169_v18 = vld [vmem:[%s1286_s6 + $0x30] sm:$0xff]   ;;  %v1171_v20 = vld [vmem:[%s1286_s6 + $0x38] sm:$0xff]  }
  0x1a   : > { %v1170_v19 = vld [vmem:[%s1286_s6 + $0x70] sm:$0xff]   ;;  %v1172_v21 = vld [vmem:[%s1286_s6 + $0x78] sm:$0xff]  }
  0x1f   : > { %1083 = vmatmul.mubr.msk.bf16.gmra.mrb[4].mxu0 %vm365_vm2, %v1163_v12 }
  0x20   : > { %1099 = vmatmul.mubr.msk.bf16.gmra.mrb[4].mxu1 %vm365_vm2, %v1164_v13  ;;  %1086 = vmatprep.mubr.msk.bf16.mxu0 %vm365_vm2, %v1165_v14 }
  0x21   : > { %1102 = vmatprep.mubr.msk.bf16.mxu1 %vm365_vm2, %v1166_v15 }
  0x27   : > { %1087 = vmatmul.mubr.msk.bf16.gmra.mrb[8].mxu0 %vm365_vm2, %v1167_v16 }
  0x28   : > { %1103 = vmatmul.mubr.msk.bf16.gmra.mrb[8].mxu1 %vm365_vm2, %v1168_v17  ;;  %1090 = vmatprep.mubr.msk.bf16.mxu0 %vm365_vm2, %v1169_v18 }
  0x29   : > { %1106 = vmatprep.mubr.msk.bf16.mxu1 %vm365_vm2, %v1170_v19 }
  0x2f   : > { %1091 = vmatmul.mubr.msk.bf16.gmra.mrb[12].mxu0 %vm365_vm2, %v1171_v20 }
  0x30   : > { %1107 = vmatmul.mubr.msk.bf16.gmra.mrb[12].mxu1 %vm365_vm2, %v1172_v21 }
  0xea   : > { %v1080_v23 = vpop.f32.mrb[0].mxu0 }
  0xeb   : > { %v591_v25 = vmul.f32 %v1080_v23, %v1323_v22  ;;  %v1096_v26 = vpop.f32.mrb[0].mxu1  ;;  %v455_v27 = vpop.f32.mrb[1].mxu0 }
  0xec   : > { %v607_v28 = vmul.f32 %v1096_v26, %v1323_v22  ;;  %v589_v29 = vmul.f32 %v1323_v22, %v455_v27  ;;  %v519_v30 = vpop.f32.mrb[1].mxu1  ;;  %v1081_v31 = vpop.f32.mrb[2].mxu0 }
  0xed   : > { %v630_v32 = vadd.f32 %v1328_v24, %v591_v25  ;;  %v605_v33 = vmul.f32 %v1323_v22, %v519_v30  ;;  %v592_v34 = vmul.f32 %v1081_v31, %v1323_v22  ;;  %v1097_v35 = vpop.f32.mrb[2].mxu1  ;;  %v458_v36 = vpop.f32.mrb[3].mxu0 }
  0xee   : > { %v646_v37 = vadd.f32 %v1328_v24, %v607_v28  ;;  %v628_v38 = vadd.f32 %v1328_v24, %v589_v29  ;;  %v608_v39 = vmul.f32 %v1097_v35, %v1323_v22  ;;  %v590_v40 = vmul.f32 %v1323_v22, %v458_v36  ;;  %v522_v41 = vpop.f32.mrb[3].mxu1 }
  0xef   : > { %v662_v42 = vmax.f32 %v630_v32, 0.0  ;;  %v644_v43 = vadd.f32 %v1328_v24, %v605_v33  ;;  %v631_v44 = vadd.f32 %v1328_v24, %v592_v34  ;;  %v606_v45 = vmul.f32 %v1323_v22, %v522_v41 }
  0xf0   : > { %v678_v46 = vmax.f32 %v646_v37, 0.0  ;;  %v660_v47 = vmax.f32 %v628_v38, 0.0  ;;  %v647_v48 = vadd.f32 %v1328_v24, %v608_v39  ;;  %v629_v49 = vadd.f32 %v1328_v24, %v590_v40 }
  0xf1   : > { %v1026_v50 = vpack.c.bf16 %v662_v42, %v662_v42  ;;  %v676_v51 = vmax.f32 %v644_v43, 0.0  ;;  %v663_v52 = vmax.f32 %v631_v44, 0.0  ;;  %v645_v53 = vadd.f32 %v1328_v24, %v606_v45 }
  0xf2   : > { %v1042_v54 = vpack.c.bf16 %v678_v46, %v678_v46  ;;  %v1024_v55 = vpack.c.bf16 %v660_v47, %v660_v47  ;;  %v679_v56 = vmax.f32 %v647_v48, 0.0  ;;  %v661_v57 = vmax.f32 %v629_v49, 0.0  ;;  %v1084_v58 = vpop.f32.mrb[4].mxu0 }
  0xf3   : > { %823 = vst.msk [vmem:[%s1348_s13 + $0x8] sm:$0xf] %vm820_vm3, %v1026_v50  ;;  %v1040_v59 = vpack.c.bf16 %v676_v51, %v676_v51  ;;  %v1027_v60 = vpack.c.bf16 %v663_v52, %v663_v52  ;;  %v677_v61 = vmax.f32 %v645_v53, 0.0  ;;  %v595_v62 = vmul.f32 %v1084_v58, %v1323_v22  ;;  %v1100_v63 = vpop.f32.mrb[4].mxu1  ;;  %v471_v0 = vpop.f32.mrb[5].mxu0 }
  0xf4   : > { %839 = vst.msk [vmem:[%s1348_s13 + $0x48] sm:$0xf] %vm820_vm3, %v1042_v54  ;;  %821 = vst.msk [vmem:[%s1348_s13] sm:$0xf] %vm820_vm3, %v1024_v55  ;;  %v1043_v1 = vpack.c.bf16 %v679_v56, %v679_v56  ;;  %v1025_v2 = vpack.c.bf16 %v661_v57, %v661_v57  ;;  %v611_v3 = vmul.f32 %v1100_v63, %v1323_v22  ;;  %v535_v5 = vpop.f32.mrb[5].mxu1  ;;  %v1085_v6 = vpop.f32.mrb[6].mxu0 }
  0xf5   : > { %v593_v4 = vmul.f32 %v1323_v22, %v471_v0  ;;  %837 = vst.msk [vmem:[%s1348_s13 + $0x40] sm:$0xf] %vm820_vm3, %v1040_v59  ;;  %824 = vst.msk [vmem:[%s1348_s13 + $0xc] sm:$0xf] %vm820_vm3, %v1027_v60  ;;  %v1041_v7 = vpack.c.bf16 %v677_v61, %v677_v61  ;;  %v634_v8 = vadd.f32 %v1328_v24, %v595_v62  ;;  %v1101_v11 = vpop.f32.mrb[6].mxu1  ;;  %v474_v12 = vpop.f32.mrb[7].mxu0 }
  0xf6   : > { %v609_v9 = vmul.f32 %v1323_v22, %v535_v5  ;;  %v596_v10 = vmul.f32 %v1085_v6, %v1323_v22  ;;  %840 = vst.msk [vmem:[%s1348_s13 + $0x4c] sm:$0xf] %vm820_vm3, %v1043_v1  ;;  %822 = vst.msk [vmem:[%s1348_s13 + $0x4] sm:$0xf] %vm820_vm3, %v1025_v2  ;;  %v650_v13 = vadd.f32 %v1328_v24, %v611_v3  ;;  %v538_v17 = vpop.f32.mrb[7].mxu1 }
  0xf7   : > { %v632_v14 = vadd.f32 %v1328_v24, %v593_v4  ;;  %v612_v15 = vmul.f32 %v1101_v11, %v1323_v22  ;;  %v594_v16 = vmul.f32 %v1323_v22, %v474_v12  ;;  %838 = vst.msk [vmem:[%s1348_s13 + $0x44] sm:$0xf] %vm820_vm3, %v1041_v7  ;;  %v666_v18 = vmax.f32 %v634_v8, 0.0 }
  0xf8   : > { %v648_v19 = vadd.f32 %v1328_v24, %v609_v9  ;;  %v635_v20 = vadd.f32 %v1328_v24, %v596_v10  ;;  %v610_v21 = vmul.f32 %v1323_v22, %v538_v17  ;;  %v682_v23 = vmax.f32 %v650_v13, 0.0 }
  0xf9   : > { %v664_v25 = vmax.f32 %v632_v14, 0.0  ;;  %v651_v26 = vadd.f32 %v1328_v24, %v612_v15  ;;  %v633_v27 = vadd.f32 %v1328_v24, %v594_v16  ;;  %v1030_v28 = vpack.c.bf16 %v666_v18, %v666_v18 }
  0xfa   : > { %v680_v29 = vmax.f32 %v648_v19, 0.0  ;;  %v667_v30 = vmax.f32 %v635_v20, 0.0  ;;  %v649_v31 = vadd.f32 %v1328_v24, %v610_v21  ;;  %v1046_v32 = vpack.c.bf16 %v682_v23, %v682_v23  ;;  %v1088_v36 = vpop.f32.mrb[8].mxu0 }
  0xfb   : > { %v1028_v33 = vpack.c.bf16 %v664_v25, %v664_v25  ;;  %v683_v34 = vmax.f32 %v651_v26, 0.0  ;;  %v665_v35 = vmax.f32 %v633_v27, 0.0  ;;  %827 = vst.msk [vmem:[%s1348_s13 + $0x18] sm:$0xf] %vm820_vm3, %v1030_v28  ;;  %v599_v40 = vmul.f32 %v1088_v36, %v1323_v22  ;;  %v1104_v41 = vpop.f32.mrb[8].mxu1  ;;  %v487_v42 = vpop.f32.mrb[9].mxu0 }
  0xfc   : > { %v1044_v37 = vpack.c.bf16 %v680_v29, %v680_v29  ;;  %v1031_v38 = vpack.c.bf16 %v667_v30, %v667_v30  ;;  %v681_v39 = vmax.f32 %v649_v31, 0.0  ;;  %843 = vst.msk [vmem:[%s1348_s13 + $0x58] sm:$0xf] %vm820_vm3, %v1046_v32  ;;  %v615_v45 = vmul.f32 %v1104_v41, %v1323_v22  ;;  %v551_v47 = vpop.f32.mrb[9].mxu1  ;;  %v1089_v48 = vpop.f32.mrb[10].mxu0 }
  0xfd   : > { %825 = vst.msk [vmem:[%s1348_s13 + $0x10] sm:$0xf] %vm820_vm3, %v1028_v33  ;;  %v1047_v43 = vpack.c.bf16 %v683_v34, %v683_v34  ;;  %v1029_v44 = vpack.c.bf16 %v665_v35, %v665_v35  ;;  %v597_v46 = vmul.f32 %v1323_v22, %v487_v42  ;;  %v638_v50 = vadd.f32 %v1328_v24, %v599_v40  ;;  %v1105_v53 = vpop.f32.mrb[10].mxu1  ;;  %v490_v54 = vpop.f32.mrb[11].mxu0 }
  0xfe   : > { %841 = vst.msk [vmem:[%s1348_s13 + $0x50] sm:$0xf] %vm820_vm3, %v1044_v37  ;;  %828 = vst.msk [vmem:[%s1348_s13 + $0x1c] sm:$0xf] %vm820_vm3, %v1031_v38  ;;  %v1045_v49 = vpack.c.bf16 %v681_v39, %v681_v39  ;;  %v613_v51 = vmul.f32 %v1323_v22, %v551_v47  ;;  %v600_v52 = vmul.f32 %v1089_v48, %v1323_v22  ;;  %v554_v59 = vpop.f32.mrb[11].mxu1 }
  0xff   : > { %844 = vst.msk [vmem:[%s1348_s13 + $0x5c] sm:$0xf] %vm820_vm3, %v1047_v43  ;;  %826 = vst.msk [vmem:[%s1348_s13 + $0x14] sm:$0xf] %vm820_vm3, %v1029_v44  ;;  %v654_v55 = vadd.f32 %v1328_v24, %v615_v45  ;;  %v636_v56 = vadd.f32 %v1328_v24, %v597_v46  ;;  %v616_v57 = vmul.f32 %v1105_v53, %v1323_v22  ;;  %v670_v60 = vmax.f32 %v638_v50, 0.0 }
 0x100   : > { %v598_v58 = vmul.f32 %v1323_v22, %v490_v54  ;;  %842 = vst.msk [vmem:[%s1348_s13 + $0x54] sm:$0xf] %vm820_vm3, %v1045_v49  ;;  %v652_v61 = vadd.f32 %v1328_v24, %v613_v51  ;;  %v639_v62 = vadd.f32 %v1328_v24, %v600_v52  ;;  %v614_v63 = vmul.f32 %v1323_v22, %v554_v59 }
 0x101   : > { %v686_v0 = vmax.f32 %v654_v55, 0.0  ;;  %v668_v1 = vmax.f32 %v636_v56, 0.0  ;;  %v655_v2 = vadd.f32 %v1328_v24, %v616_v57  ;;  %v1034_v4 = vpack.c.bf16 %v670_v60, %v670_v60 }
 0x102   : > { %v637_v3 = vadd.f32 %v1328_v24, %v598_v58  ;;  %v684_v5 = vmax.f32 %v652_v61, 0.0  ;;  %v671_v6 = vmax.f32 %v639_v62, 0.0  ;;  %v653_v7 = vadd.f32 %v1328_v24, %v614_v63  ;;  %v1092_v12 = vpop.f32.mrb[12].mxu0 }
 0x103   : > { %v1050_v8 = vpack.c.bf16 %v686_v0, %v686_v0  ;;  %v1032_v9 = vpack.c.bf16 %v668_v1, %v668_v1  ;;  %v687_v10 = vmax.f32 %v655_v2, 0.0  ;;  %831 = vst.msk [vmem:[%s1348_s13 + $0x28] sm:$0xf] %vm820_vm3, %v1034_v4  ;;  %v603_v16 = vmul.f32 %v1092_v12, %v1323_v22  ;;  %v1108_v17 = vpop.f32.mrb[12].mxu1  ;;  %v503_v18 = vpop.f32.mrb[13].mxu0 }
 0x104   : > { %v669_v11 = vmax.f32 %v637_v3, 0.0  ;;  %v1048_v13 = vpack.c.bf16 %v684_v5, %v684_v5  ;;  %v1035_v14 = vpack.c.bf16 %v671_v6, %v671_v6  ;;  %v685_v15 = vmax.f32 %v653_v7, 0.0  ;;  %v567_v25 = vpop.f32.mrb[13].mxu1  ;;  %v1093_v26 = vpop.f32.mrb[14].mxu0 }
 0x105   : > { %847 = vst.msk [vmem:[%s1348_s13 + $0x68] sm:$0xf] %vm820_vm3, %v1050_v8  ;;  %829 = vst.msk [vmem:[%s1348_s13 + $0x20] sm:$0xf] %vm820_vm3, %v1032_v9  ;;  %v1051_v19 = vpack.c.bf16 %v687_v10, %v687_v10  ;;  %v619_v21 = vmul.f32 %v1108_v17, %v1323_v22  ;;  %v601_v23 = vmul.f32 %v1323_v22, %v503_v18  ;;  %v1109_v31 = vpop.f32.mrb[14].mxu1  ;;  %v506_v32 = vpop.f32.mrb[15].mxu0 }
 0x106   : > { %v1033_v20 = vpack.c.bf16 %v669_v11, %v669_v11  ;;  %845 = vst.msk [vmem:[%s1348_s13 + $0x60] sm:$0xf] %vm820_vm3, %v1048_v13  ;;  %832 = vst.msk [vmem:[%s1348_s13 + $0x2c] sm:$0xf] %vm820_vm3, %v1035_v14  ;;  %v1049_v27 = vpack.c.bf16 %v685_v15, %v685_v15  ;;  %v642_v28 = vadd.f32 %v1328_v24, %v603_v16  ;;  %v570_v37 = vpop.f32.mrb[15].mxu1 }
 0x107   : > { %v617_v29 = vmul.f32 %v1323_v22, %v567_v25  ;;  %v604_v30 = vmul.f32 %v1093_v26, %v1323_v22  ;;  %848 = vst.msk [vmem:[%s1348_s13 + $0x6c] sm:$0xf] %vm820_vm3, %v1051_v19  ;;  %v658_v33 = vadd.f32 %v1328_v24, %v619_v21  ;;  %v640_v34 = vadd.f32 %v1328_v24, %v601_v23 }
 0x108   : > { %830 = vst.msk [vmem:[%s1348_s13 + $0x24] sm:$0xf] %vm820_vm3, %v1033_v20  ;;  %v620_v35 = vmul.f32 %v1109_v31, %v1323_v22  ;;  %v602_v36 = vmul.f32 %v1323_v22, %v506_v32  ;;  %846 = vst.msk [vmem:[%s1348_s13 + $0x64] sm:$0xf] %vm820_vm3, %v1049_v27  ;;  %v674_v38 = vmax.f32 %v642_v28, 0.0  ;;  %v618_v41 = vmul.f32 %v1323_v22, %v570_v37 }
 0x109   : > { %v656_v39 = vadd.f32 %v1328_v24, %v617_v29  ;;  %v643_v40 = vadd.f32 %v1328_v24, %v604_v30  ;;  %v690_v42 = vmax.f32 %v658_v33, 0.0  ;;  %v672_v43 = vmax.f32 %v640_v34, 0.0 }
 0x10a   : > { %v659_v44 = vadd.f32 %v1328_v24, %v620_v35  ;;  %v641_v45 = vadd.f32 %v1328_v24, %v602_v36  ;;  %v1038_v46 = vpack.c.bf16 %v674_v38, %v674_v38  ;;  %v657_v49 = vadd.f32 %v1328_v24, %v618_v41 }
 0x10b   : > { %v688_v47 = vmax.f32 %v656_v39, 0.0  ;;  %v675_v48 = vmax.f32 %v643_v40, 0.0  ;;  %v1054_v50 = vpack.c.bf16 %v690_v42, %v690_v42  ;;  %v1036_v51 = vpack.c.bf16 %v672_v43, %v672_v43 }
 0x10c   : > { %v691_v22 = vmax.f32 %v659_v44, 0.0  ;;  %v673_v52 = vmax.f32 %v641_v45, 0.0  ;;  %835 = vst.msk [vmem:[%s1348_s13 + $0x38] sm:$0xf] %vm820_vm3, %v1038_v46  ;;  %v689_v55 = vmax.f32 %v657_v49, 0.0 }
 0x10d   : > { %v1052_v53 = vpack.c.bf16 %v688_v47, %v688_v47  ;;  %v1039_v54 = vpack.c.bf16 %v675_v48, %v675_v48  ;;  %851 = vst.msk [vmem:[%s1348_s13 + $0x78] sm:$0xf] %vm820_vm3, %v1054_v50  ;;  %833 = vst.msk [vmem:[%s1348_s13 + $0x30] sm:$0xf] %vm820_vm3, %v1036_v51 }
 0x10e   : > { %v1055_v56 = vpack.c.bf16 %v691_v22, %v691_v22  ;;  %v1037_v57 = vpack.c.bf16 %v673_v52, %v673_v52  ;;  %v1053_v24 = vpack.c.bf16 %v689_v55, %v689_v55 }
 0x10f   : > { %849 = vst.msk [vmem:[%s1348_s13 + $0x70] sm:$0xf] %vm820_vm3, %v1052_v53  ;;  %836 = vst.msk [vmem:[%s1348_s13 + $0x3c] sm:$0xf] %vm820_vm3, %v1039_v54 }
 0x110   : > { %852 = vst.msk [vmem:[%s1348_s13 + $0x7c] sm:$0xf] %vm820_vm3, %v1055_v56  ;;  %834 = vst.msk [vmem:[%s1348_s13 + $0x34] sm:$0xf] %vm820_vm3, %v1037_v57 }
 0x111   : > { %850 = vst.msk [vmem:[%s1348_s13 + $0x74] sm:$0xf] %vm820_vm3, %v1053_v24 }
 0x112 PF: > { %s14_s19 = sadd.s32 1, %s1211_s19   ;;  %s1485_s15 = smov %s1203_s17 }
 0x113   : > { %p11_p7 = scmp.ge.s32.totalorder %s14_s19, 10   ;;  %s1486_s16 = smov %s1207_s18 }
 0x114   : > { %s1487_s17 = smov %s1490_s20  ;;  %s1488_s18 = smov %s1494_s21 }
 0x115   :  { %13 = sbr.rel (!%p11_p7) target bundleno = 3 (0x3), region = 66 }

</bundles_post_ra>
